<compile_context>
chip_gen: v7x
topology: tpu7x:2x2x1
jax: 0.10.0
libtpu: 0.0.40
codegen_flags: <defaults>
</compile_context>

<pallas_src>
import jax
import jax.numpy as jnp
from jax.experimental import pallas as pl
from jax.experimental.pallas import tpu as pltpu


def _round_up(x, m):
    return (x + m - 1) // m * m


def _etoy_kernel(e_ref, m2_ref, p_ref, w_ref, b_ref, o_ref,
                 s_e, s_me, s_me2, s_w, r_min, r_max):
    # e_ref : (TB, TR, L)  lane-packed edge features, L = k * de
    # m2_ref: (TB, TR, k)  packed edge mask (one value per packed group of de lanes)
    # p_ref : (k, L)       0/1 lane-expansion matrix, P[g, g*de + c] = 1
    # w_ref : (4*de, dy)   fused lin.weight.T
    # b_ref : (1, dy)
    # o_ref : (TB, dy)
    # scratch: per-batch-row running moments / extrema
    r = pl.program_id(1)
    nr = pl.num_programs(1)

    TB, TR, L = e_ref.shape
    k = m2_ref.shape[-1]
    de = w_ref.shape[0] // 4

    @pl.when(r == 0)
    def _init():
        s_e[...] = jnp.zeros_like(s_e)
        s_me[...] = jnp.zeros_like(s_me)
        s_me2[...] = jnp.zeros_like(s_me2)
        s_w[...] = jnp.zeros_like(s_w)
        r_min[...] = jnp.full_like(r_min, 3.0e38)
        r_max[...] = jnp.full_like(r_max, -3.0e38)

    pexp = p_ref[...] if k > 1 else None

    for t in range(TB):  # static unroll, TB <= 8; all inner ops stay 2D
        et = e_ref[t].astype(jnp.float32)        # (TR, L)
        m2t = m2_ref[t].astype(jnp.float32)      # (TR, k)
        if k > 1:
            # expand mask to all de lanes of each packed group via a tiny matmul
            mt = jnp.dot(m2t, pexp, preferred_element_type=jnp.float32)   # (TR, L)
        else:
            mt = jnp.broadcast_to(m2t, (TR, L))

        row = pl.ds(t, 1)
        emt = et * mt
        s_e[row, :] = s_e[row, :] + jnp.sum(et, axis=0, keepdims=True)
        s_me[row, :] = s_me[row, :] + jnp.sum(emt, axis=0, keepdims=True)
        s_me2[row, :] = s_me2[row, :] + jnp.sum(emt * et, axis=0, keepdims=True)
        s_w[row, :] = s_w[row, :] + jnp.sum(m2t, axis=0, keepdims=True)
        big = 100000.0 * (1.0 - mt)
        r_min[row, :] = jnp.minimum(r_min[row, :],
                                    jnp.min(et + big, axis=0, keepdims=True))
        r_max[row, :] = jnp.maximum(r_max[row, :],
                                    jnp.max(et - big, axis=0, keepdims=True))

    @pl.when(r == nr - 1)
    def _finish():
        def group_reduce(x, op):
            # lane tree-reduce over the k packed groups (stride de, k is a power of 2)
            acc = x
            s = de
            while s < L:
                acc = op(acc, pltpu.roll(acc, shift=s, axis=1))
                s *= 2
            return acc[:, :de]

        se = group_reduce(s_e[...], jnp.add)          # (TB, de) unmasked sum(E)
        sme = group_reduce(s_me[...], jnp.add)        # sum(mask*E)
        sme2 = group_reduce(s_me2[...], jnp.add)      # sum(mask*E^2)
        mi = group_reduce(r_min[...], jnp.minimum)
        ma = group_reduce(r_max[...], jnp.maximum)
        divide = jnp.sum(s_w[...], axis=1, keepdims=True)   # (TB, 1)

        m = se / divide                                # matches torch: unmasked sum / count
        # single-pass std: sum(mask*(E-m)^2) = sme2 - 2*m*sme + m^2*divide
        std = (sme2 - 2.0 * m * sme + m * m * divide) / divide

        wt = w_ref[...]                                # (4*de, dy), one fused weight DMA
        out = (jnp.dot(m, wt[0:de, :], preferred_element_type=jnp.float32)
               + jnp.dot(mi, wt[de:2 * de, :], preferred_element_type=jnp.float32)
               + jnp.dot(ma, wt[2 * de:3 * de, :], preferred_element_type=jnp.float32)
               + jnp.dot(std, wt[3 * de:4 * de, :], preferred_element_type=jnp.float32)
               + b_ref[...])
        o_ref[...] = out.astype(o_ref.dtype)


def etoy_forward(E, e_mask1, e_mask2, weight, bias, *, row_chunk=512):
    """E: (bs, n, n, de); e_mask1: (bs, n, 1, 1); e_mask2: (bs, 1, n, 1);
    weight: (dy, 4*de) like nn.Linear; bias: (dy,). Returns (bs, dy) float32."""
    bs, n, n_b, de = E.shape
    assert n == n_b
    dy = weight.shape[0]
    n2 = n * n

    # lane packing: fold k edge positions into the last (lane) axis (pure view reshape)
    k = 128 // de if (de <= 128 and 128 % de == 0) else 1
    L = k * de

    # batch blocking
    TB = bs if bs < 8 else 8
    bs_pad = _round_up(bs, TB)

    # row chunking over packed positions (reduction axis of the grid)
    R_raw = -(-n2 // k)
    n_chunks = -(-R_raw // row_chunk)
    TR = _round_up(-(-R_raw // n_chunks), 8)
    R_pad = TR * n_chunks
    P2 = R_pad * k                      # padded number of flat edge positions

    # small (bs, n2) edge mask built from node masks; never expanded to de in HBM
    mask_flat = (e_mask1.reshape(bs, n, 1).astype(jnp.float32)
                 * e_mask2.reshape(bs, 1, n).astype(jnp.float32)).reshape(bs, n2)

    # pad (E=0, mask=0 is neutral for every statistic) and pack
    E_flat = E.reshape(bs, n2, de)       # keep input dtype; upcast per-tile in kernel
    if bs_pad > bs or P2 > n2:
        E_flat = jnp.pad(E_flat, ((0, bs_pad - bs), (0, P2 - n2), (0, 0)))
        mask_flat = jnp.pad(mask_flat, ((0, bs_pad - bs), (0, P2 - n2)))
    E_pack = E_flat.reshape(bs_pad, R_pad, L)
    mask_pack = mask_flat.reshape(bs_pad, R_pad, k)

    # constant 0/1 lane-expansion matrix P[g, g*de + c] = 1 (used on the MXU in-kernel)
    g_idx = jnp.arange(k, dtype=jnp.int32)[:, None]
    l_idx = jnp.arange(L, dtype=jnp.int32)[None, :]
    expand = (l_idx // de == g_idx).astype(jnp.float32)     # (k, L)

    wt = weight.astype(jnp.float32).T                        # (4*de, dy)
    b2 = bias.astype(jnp.float32).reshape(1, dy)

    grid = (bs_pad // TB, n_chunks)

    out = pl.pallas_call(
        _etoy_kernel,
        out_shape=jax.ShapeDtypeStruct((bs_pad, dy), jnp.float32),
        grid=grid,
        in_specs=[
            pl.BlockSpec((TB, TR, L), lambda b, r: (b, r, 0)),
            pl.BlockSpec((TB, TR, k), lambda b, r: (b, r, 0)),
            pl.BlockSpec((k, L), lambda b, r: (0, 0)),
            pl.BlockSpec((4 * de, dy), lambda b, r: (0, 0)),
            pl.BlockSpec((1, dy), lambda b, r: (0, 0)),
        ],
        out_specs=pl.BlockSpec((TB, dy), lambda b, r: (b, 0)),
        scratch_shapes=[
            pltpu.VMEM((TB, L), jnp.float32),   # sum(E)
            pltpu.VMEM((TB, L), jnp.float32),   # sum(mask*E)
            pltpu.VMEM((TB, L), jnp.float32),   # sum(mask*E^2)
            pltpu.VMEM((TB, k), jnp.float32),   # sum(mask)
            pltpu.VMEM((TB, L), jnp.float32),   # running min
            pltpu.VMEM((TB, L), jnp.float32),   # running max
        ],
        compiler_params=pltpu.CompilerParams(
            dimension_semantics=("parallel", "arbitrary"),
            vmem_limit_bytes=32 * 1024 * 1024,
        ),
    )(E_pack, mask_pack, expand, wt, b2)
    return out[:bs]


def etoy_reference(E, e_mask1, e_mask2, weight, bias):
    """Pure-JAX replica of the torch forward for validation."""
    E = E.astype(jnp.float32)
    mask = jnp.broadcast_to(
        e_mask1.astype(jnp.float32) * e_mask2.astype(jnp.float32), E.shape
    )
    float_imask = 1.0 - mask
    divide = jnp.sum(mask, axis=(1, 2))
    m = jnp.sum(E, axis=(1, 2)) / divide
    mi = jnp.min(jnp.min(E + 100000.0 * float_imask, axis=2), axis=1)
    ma = jnp.max(jnp.max(E - 100000.0 * float_imask, axis=2), axis=1)
    std = jnp.sum((E - m[:, None, None, :]) ** 2 * mask, axis=(1, 2)) / divide
    z = jnp.concatenate([m, mi, ma, std], axis=-1)
    return z @ weight.astype(jnp.float32).T + bias.astype(jnp.float32)


if __name__ == "__main__":
    key = jax.random.PRNGKey(0)
    bs, n, de, dy = 2, 8, 8, 16

    k1, k2, k3, k4 = jax.random.split(key, 4)
    E = jax.random.normal(k1, (bs, n, n, de), dtype=jnp.float32)

    # node masks -> edge masks (ensure at least a few valid nodes per batch)
    node_valid = (jax.random.uniform(k2, (bs, n)) > 0.3).astype(jnp.float32)
    node_valid = node_valid.at[:, 0:2].set(1.0)
    e_mask1 = node_valid.reshape(bs, n, 1, 1)
    e_mask2 = node_valid.reshape(bs, 1, n, 1)

    # deterministic synthetic parameters for nn.Linear(4*de, dy)
    weight = jax.random.normal(k3, (dy, 4 * de), dtype=jnp.float32) * 0.1
    bias = jax.random.normal(k4, (dy,), dtype=jnp.float32) * 0.1

    out = jax.block_until_ready(etoy_forward(E, e_mask1, e_mask2, weight, bias))

    ref = etoy_reference(E, e_mask1, e_mask2, weight, bias)
    assert out.shape == (bs, dy)
    assert jnp.allclose(out, ref, atol=1e-4, rtol=1e-4), (out, ref)
    print("KERNEL_OK")
</pallas_src>

<mosaic_0001>
module attributes {stable_mosaic.version = 11 : i64} {
  func.func @_etoy_kernel(%arg0: i32, %arg1: i32, %arg2: memref<2x8x128xf32, #tpu.memory_space<vmem>>, %arg3: memref<2x8x16xf32, #tpu.memory_space<vmem>>, %arg4: memref<16x128xf32, #tpu.memory_space<vmem>>, %arg5: memref<32x16xf32, #tpu.memory_space<vmem>>, %arg6: memref<1x16xf32, #tpu.memory_space<vmem>>, %arg7: memref<2x16xf32, #tpu.memory_space<vmem>>, %arg8: memref<2x128xf32, #tpu.memory_space<vmem>>, %arg9: memref<2x128xf32, #tpu.memory_space<vmem>>, %arg10: memref<2x128xf32, #tpu.memory_space<vmem>>, %arg11: memref<2x16xf32, #tpu.memory_space<vmem>>, %arg12: memref<2x128xf32, #tpu.memory_space<vmem>>, %arg13: memref<2x128xf32, #tpu.memory_space<vmem>>) attributes {dimension_semantics = [#tpu.dimension_semantics<parallel>, #tpu.dimension_semantics<arbitrary>], iteration_bounds = array<i64: 1, 1>, scalar_prefetch = 0 : i64, scratch_operands = 6 : i64, tpu.core_type = #tpu.core_type<tc>, window_params = [{transform_indices = @transform_0, window_bounds = array<i64: 2, 8, 128>}, {transform_indices = @transform_1, window_bounds = array<i64: 2, 8, 16>}, {pipeline_mode = #tpu.pipeline_mode<synchronous>, transform_indices = @transform_2, window_bounds = array<i64: 16, 128>}, {pipeline_mode = #tpu.pipeline_mode<synchronous>, transform_indices = @transform_3, window_bounds = array<i64: 32, 16>}, {pipeline_mode = #tpu.pipeline_mode<synchronous>, transform_indices = @transform_4, window_bounds = array<i64: 1, 16>}, {transform_indices = @transform_5, window_bounds = array<i64: 2, 16>}]} {
    %c0_i32 = arith.constant 0 : i32
    %0 = arith.cmpi eq, %arg1, %c0_i32 : i32
    %1 = arith.extui %0 : i1 to i32
    %c0_i32_0 = arith.constant 0 : i32
    %2 = arith.cmpi ne, %1, %c0_i32_0 : i32
    scf.if %2 {
      %cst_80 = arith.constant 0.000000e+00 : f32
      %93 = vector.broadcast %cst_80 : f32 to vector<2x128xf32>
      %c0_81 = arith.constant 0 : index
      %c0_82 = arith.constant 0 : index
      %94 = vector.load %arg8[%c0_81, %c0_82] : memref<2x128xf32, #tpu.memory_space<vmem>>, vector<2x128xf32>
      tpu.vector_store %arg8[%c0_81, %c0_82], %93 {strides = array<i32>} : memref<2x128xf32, #tpu.memory_space<vmem>>, vector<2x128xf32>,
      %cst_83 = arith.constant 0.000000e+00 : f32
      %95 = vector.broadcast %cst_83 : f32 to vector<2x128xf32>
      %c0_84 = arith.constant 0 : index
      %c0_85 = arith.constant 0 : index
      %96 = vector.load %arg9[%c0_84, %c0_85] : memref<2x128xf32, #tpu.memory_space<vmem>>, vector<2x128xf32>
      tpu.vector_store %arg9[%c0_84, %c0_85], %95 {strides = array<i32>} : memref<2x128xf32, #tpu.memory_space<vmem>>, vector<2x128xf32>,
      %cst_86 = arith.constant 0.000000e+00 : f32
      %97 = vector.broadcast %cst_86 : f32 to vector<2x128xf32>
      %c0_87 = arith.constant 0 : index
      %c0_88 = arith.constant 0 : index
      %98 = vector.load %arg10[%c0_87, %c0_88] : memref<2x128xf32, #tpu.memory_space<vmem>>, vector<2x128xf32>
      tpu.vector_store %arg10[%c0_87, %c0_88], %97 {strides = array<i32>} : memref<2x128xf32, #tpu.memory_space<vmem>>, vector<2x128xf32>,
      %cst_89 = arith.constant 0.000000e+00 : f32
      %99 = vector.broadcast %cst_89 : f32 to vector<2x16xf32>
      %c0_90 = arith.constant 0 : index
      %c0_91 = arith.constant 0 : index
      %100 = vector.load %arg11[%c0_90, %c0_91] : memref<2x16xf32, #tpu.memory_space<vmem>>, vector<2x16xf32>
      tpu.vector_store %arg11[%c0_90, %c0_91], %99 {strides = array<i32>} : memref<2x16xf32, #tpu.memory_space<vmem>>, vector<2x16xf32>,
      %cst_92 = arith.constant 3.000000e+38 : f32
      %101 = vector.broadcast %cst_92 : f32 to vector<2x128xf32>
      %c0_93 = arith.constant 0 : index
      %c0_94 = arith.constant 0 : index
      %102 = vector.load %arg12[%c0_93, %c0_94] : memref<2x128xf32, #tpu.memory_space<vmem>>, vector<2x128xf32>
      tpu.vector_store %arg12[%c0_93, %c0_94], %101 {strides = array<i32>} : memref<2x128xf32, #tpu.memory_space<vmem>>, vector<2x128xf32>,
      %cst_95 = arith.constant -3.000000e+38 : f32
      %103 = vector.broadcast %cst_95 : f32 to vector<2x128xf32>
      %c0_96 = arith.constant 0 : index
      %c0_97 = arith.constant 0 : index
      %104 = vector.load %arg13[%c0_96, %c0_97] : memref<2x128xf32, #tpu.memory_space<vmem>>, vector<2x128xf32>
      tpu.vector_store %arg13[%c0_96, %c0_97], %103 {strides = array<i32>} : memref<2x128xf32, #tpu.memory_space<vmem>>, vector<2x128xf32>,
    } else {
    }
    %c0 = arith.constant 0 : index
    %c0_1 = arith.constant 0 : index
    %3 = vector.load %arg4[%c0, %c0_1] : memref<16x128xf32, #tpu.memory_space<vmem>>, vector<16x128xf32>
    %c0_2 = arith.constant 0 : index
    %c0_3 = arith.constant 0 : index
    %c0_4 = arith.constant 0 : index
    %4 = vector.load %arg2[%c0_2, %c0_3, %c0_4] : memref<2x8x128xf32, #tpu.memory_space<vmem>>, vector<1x8x128xf32>
    %5 = vector.shape_cast %4 : vector<1x8x128xf32> to vector<8x128xf32>
    %c0_5 = arith.constant 0 : index
    %c0_6 = arith.constant 0 : index
    %c0_7 = arith.constant 0 : index
    %6 = vector.load %arg3[%c0_5, %c0_6, %c0_7] : memref<2x8x16xf32, #tpu.memory_space<vmem>>, vector<1x8x16xf32>
    %7 = vector.shape_cast %6 : vector<1x8x16xf32> to vector<8x16xf32>
    %cst = arith.constant dense<0.000000e+00> : vector<8x128xf32>
    %8 = tpu.matmul %7, %3, %cst {dimension_numbers = #tpu.dot_dimension_numbers<[1], [0], [0], [1], [0, 0, 1, 1], [], []>} : vector<8x16xf32>, vector<16x128xf32>, vector<8x128xf32> -> vector<8x128xf32>
    %9 = arith.mulf %5, %8 : vector<8x128xf32>
    %c0_8 = arith.constant 0 : index
    %c0_9 = arith.constant 0 : index
    %10 = vector.load %arg8[%c0_8, %c0_9] : memref<2x128xf32, #tpu.memory_space<vmem>>, vector<1x128xf32>
    %cst_10 = arith.constant dense<0.000000e+00> : vector<128xf32>
    %11 = vector.multi_reduction <add>, %5, %cst_10 [0] : vector<8x128xf32> to vector<128xf32>
    %12 = vector.shape_cast %11 : vector<128xf32> to vector<1x128xf32>
    %13 = arith.addf %10, %12 : vector<1x128xf32>
    %c0_11 = arith.constant 0 : index
    %c0_12 = arith.constant 0 : index
    %14 = vector.load %arg8[%c0_11, %c0_12] : memref<2x128xf32, #tpu.memory_space<vmem>>, vector<1x128xf32>
    tpu.vector_store %arg8[%c0_11, %c0_12], %13 {strides = array<i32>} : memref<2x128xf32, #tpu.memory_space<vmem>>, vector<1x128xf32>,
    %c0_13 = arith.constant 0 : index
    %c0_14 = arith.constant 0 : index
    %15 = vector.load %arg9[%c0_13, %c0_14] : memref<2x128xf32, #tpu.memory_space<vmem>>, vector<1x128xf32>
    %cst_15 = arith.constant dense<0.000000e+00> : vector<128xf32>
    %16 = vector.multi_reduction <add>, %9, %cst_15 [0] : vector<8x128xf32> to vector<128xf32>
    %17 = vector.shape_cast %16 : vector<128xf32> to vector<1x128xf32>
    %18 = arith.addf %15, %17 : vector<1x128xf32>
    %c0_16 = arith.constant 0 : index
    %c0_17 = arith.constant 0 : index
    %19 = vector.load %arg9[%c0_16, %c0_17] : memref<2x128xf32, #tpu.memory_space<vmem>>, vector<1x128xf32>
    tpu.vector_store %arg9[%c0_16, %c0_17], %18 {strides = array<i32>} : memref<2x128xf32, #tpu.memory_space<vmem>>, vector<1x128xf32>,
    %c0_18 = arith.constant 0 : index
    %c0_19 = arith.constant 0 : index
    %20 = vector.load %arg10[%c0_18, %c0_19] : memref<2x128xf32, #tpu.memory_space<vmem>>, vector<1x128xf32>
    %21 = arith.mulf %9, %5 : vector<8x128xf32>
    %cst_20 = arith.constant dense<0.000000e+00> : vector<128xf32>
    %22 = vector.multi_reduction <add>, %21, %cst_20 [0] : vector<8x128xf32> to vector<128xf32>
    %23 = vector.shape_cast %22 : vector<128xf32> to vector<1x128xf32>
    %24 = arith.addf %20, %23 : vector<1x128xf32>
    %c0_21 = arith.constant 0 : index
    %c0_22 = arith.constant 0 : index
    %25 = vector.load %arg10[%c0_21, %c0_22] : memref<2x128xf32, #tpu.memory_space<vmem>>, vector<1x128xf32>
    tpu.vector_store %arg10[%c0_21, %c0_22], %24 {strides = array<i32>} : memref<2x128xf32, #tpu.memory_space<vmem>>, vector<1x128xf32>,
    %c0_23 = arith.constant 0 : index
    %c0_24 = arith.constant 0 : index
    %26 = vector.load %arg11[%c0_23, %c0_24] : memref<2x16xf32, #tpu.memory_space<vmem>>, vector<1x16xf32>
    %cst_25 = arith.constant dense<0.000000e+00> : vector<16xf32>
    %27 = vector.multi_reduction <add>, %7, %cst_25 [0] : vector<8x16xf32> to vector<16xf32>
    %28 = vector.shape_cast %27 : vector<16xf32> to vector<1x16xf32>
    %29 = arith.addf %26, %28 : vector<1x16xf32>
    %c0_26 = arith.constant 0 : index
    %c0_27 = arith.constant 0 : index
    %30 = vector.load %arg11[%c0_26, %c0_27] : memref<2x16xf32, #tpu.memory_space<vmem>>, vector<1x16xf32>
    tpu.vector_store %arg11[%c0_26, %c0_27], %29 {strides = array<i32>} : memref<2x16xf32, #tpu.memory_space<vmem>>, vector<1x16xf32>,
    %cst_28 = arith.constant 1.000000e+00 : f32
    %31 = vector.broadcast %cst_28 : f32 to vector<8x128xf32>
    %32 = arith.subf %31, %8 : vector<8x128xf32>
    %cst_29 = arith.constant 1.000000e+05 : f32
    %33 = vector.broadcast %cst_29 : f32 to vector<8x128xf32>
    %34 = arith.mulf %33, %32 : vector<8x128xf32>
    %c0_30 = arith.constant 0 : index
    %c0_31 = arith.constant 0 : index
    %35 = vector.load %arg12[%c0_30, %c0_31] : memref<2x128xf32, #tpu.memory_space<vmem>>, vector<1x128xf32>
    %36 = arith.addf %5, %34 : vector<8x128xf32>
    %cst_32 = arith.constant dense<0x7F800000> : vector<128xf32>
    %37 = vector.multi_reduction <minimumf>, %36, %cst_32 [0] : vector<8x128xf32> to vector<128xf32>
    %38 = vector.shape_cast %37 : vector<128xf32> to vector<1x128xf32>
    %39 = arith.minimumf %35, %38 : vector<1x128xf32>
    %c0_33 = arith.constant 0 : index
    %c0_34 = arith.constant 0 : index
    %40 = vector.load %arg12[%c0_33, %c0_34] : memref<2x128xf32, #tpu.memory_space<vmem>>, vector<1x128xf32>
    tpu.vector_store %arg12[%c0_33, %c0_34], %39 {strides = array<i32>} : memref<2x128xf32, #tpu.memory_space<vmem>>, vector<1x128xf32>,
    %c0_35 = arith.constant 0 : index
    %c0_36 = arith.constant 0 : index
    %41 = vector.load %arg13[%c0_35, %c0_36] : memref<2x128xf32, #tpu.memory_space<vmem>>, vector<1x128xf32>
    %42 = arith.subf %5, %34 : vector<8x128xf32>
    %cst_37 = arith.constant dense<0xFF800000> : vector<128xf32>
    %43 = vector.multi_reduction <maximumf>, %42, %cst_37 [0] : vector<8x128xf32> to vector<128xf32>
    %44 = vector.shape_cast %43 : vector<128xf32> to vector<1x128xf32>
    %45 = arith.maximumf %41, %44 : vector<1x128xf32>
    %c0_38 = arith.constant 0 : index
    %c0_39 = arith.constant 0 : index
    %46 = vector.load %arg13[%c0_38, %c0_39] : memref<2x128xf32, #tpu.memory_space<vmem>>, vector<1x128xf32>
    tpu.vector_store %arg13[%c0_38, %c0_39], %45 {strides = array<i32>} : memref<2x128xf32, #tpu.memory_space<vmem>>, vector<1x128xf32>,
    %c1 = arith.constant 1 : index
    %c0_40 = arith.constant 0 : index
    %c0_41 = arith.constant 0 : index
    %47 = vector.load %arg2[%c1, %c0_40, %c0_41] : memref<2x8x128xf32, #tpu.memory_space<vmem>>, vector<1x8x128xf32>
    %48 = vector.shape_cast %47 : vector<1x8x128xf32> to vector<8x128xf32>
    %c1_42 = arith.constant 1 : index
    %c0_43 = arith.constant 0 : index
    %c0_44 = arith.constant 0 : index
    %49 = vector.load %arg3[%c1_42, %c0_43, %c0_44] : memref<2x8x16xf32, #tpu.memory_space<vmem>>, vector<1x8x16xf32>
    %50 = vector.shape_cast %49 : vector<1x8x16xf32> to vector<8x16xf32>
    %cst_45 = arith.constant dense<0.000000e+00> : vector<8x128xf32>
    %51 = tpu.matmul %50, %3, %cst_45 {dimension_numbers = #tpu.dot_dimension_numbers<[1], [0], [0], [1], [0, 0, 1, 1], [], []>} : vector<8x16xf32>, vector<16x128xf32>, vector<8x128xf32> -> vector<8x128xf32>
    %52 = arith.mulf %48, %51 : vector<8x128xf32>
    %c1_46 = arith.constant 1 : index
    %c0_47 = arith.constant 0 : index
    %53 = vector.load %arg8[%c1_46, %c0_47] : memref<2x128xf32, #tpu.memory_space<vmem>>, vector<1x128xf32>
    %cst_48 = arith.constant dense<0.000000e+00> : vector<128xf32>
    %54 = vector.multi_reduction <add>, %48, %cst_48 [0] : vector<8x128xf32> to vector<128xf32>
    %55 = vector.shape_cast %54 : vector<128xf32> to vector<1x128xf32>
    %56 = arith.addf %53, %55 : vector<1x128xf32>
    %c1_49 = arith.constant 1 : index
    %c0_50 = arith.constant 0 : index
    %57 = vector.load %arg8[%c1_49, %c0_50] : memref<2x128xf32, #tpu.memory_space<vmem>>, vector<1x128xf32>
    tpu.vector_store %arg8[%c1_49, %c0_50], %56 {strides = array<i32>} : memref<2x128xf32, #tpu.memory_space<vmem>>, vector<1x128xf32>,
    %c1_51 = arith.constant 1 : index
    %c0_52 = arith.constant 0 : index
    %58 = vector.load %arg9[%c1_51, %c0_52] : memref<2x128xf32, #tpu.memory_space<vmem>>, vector<1x128xf32>
    %cst_53 = arith.constant dense<0.000000e+00> : vector<128xf32>
    %59 = vector.multi_reduction <add>, %52, %cst_53 [0] : vector<8x128xf32> to vector<128xf32>
    %60 = vector.shape_cast %59 : vector<128xf32> to vector<1x128xf32>
    %61 = arith.addf %58, %60 : vector<1x128xf32>
    %c1_54 = arith.constant 1 : index
    %c0_55 = arith.constant 0 : index
    %62 = vector.load %arg9[%c1_54, %c0_55] : memref<2x128xf32, #tpu.memory_space<vmem>>, vector<1x128xf32>
    tpu.vector_store %arg9[%c1_54, %c0_55], %61 {strides = array<i32>} : memref<2x128xf32, #tpu.memory_space<vmem>>, vector<1x128xf32>,
    %c1_56 = arith.constant 1 : index
    %c0_57 = arith.constant 0 : index
    %63 = vector.load %arg10[%c1_56, %c0_57] : memref<2x128xf32, #tpu.memory_space<vmem>>, vector<1x128xf32>
    %64 = arith.mulf %52, %48 : vector<8x128xf32>
    %cst_58 = arith.constant dense<0.000000e+00> : vector<128xf32>
    %65 = vector.multi_reduction <add>, %64, %cst_58 [0] : vector<8x128xf32> to vector<128xf32>
    %66 = vector.shape_cast %65 : vector<128xf32> to vector<1x128xf32>
    %67 = arith.addf %63, %66 : vector<1x128xf32>
    %c1_59 = arith.constant 1 : index
    %c0_60 = arith.constant 0 : index
    %68 = vector.load %arg10[%c1_59, %c0_60] : memref<2x128xf32, #tpu.memory_space<vmem>>, vector<1x128xf32>
    tpu.vector_store %arg10[%c1_59, %c0_60], %67 {strides = array<i32>} : memref<2x128xf32, #tpu.memory_space<vmem>>, vector<1x128xf32>,
    %c1_61 = arith.constant 1 : index
    %c0_62 = arith.constant 0 : index
    %69 = vector.load %arg11[%c1_61, %c0_62] : memref<2x16xf32, #tpu.memory_space<vmem>>, vector<1x16xf32>
    %cst_63 = arith.constant dense<0.000000e+00> : vector<16xf32>
    %70 = vector.multi_reduction <add>, %50, %cst_63 [0] : vector<8x16xf32> to vector<16xf32>
    %71 = vector.shape_cast %70 : vector<16xf32> to vector<1x16xf32>
    %72 = arith.addf %69, %71 : vector<1x16xf32>
    %c1_64 = arith.constant 1 : index
    %c0_65 = arith.constant 0 : index
    %73 = vector.load %arg11[%c1_64, %c0_65] : memref<2x16xf32, #tpu.memory_space<vmem>>, vector<1x16xf32>
    tpu.vector_store %arg11[%c1_64, %c0_65], %72 {strides = array<i32>} : memref<2x16xf32, #tpu.memory_space<vmem>>, vector<1x16xf32>,
    %cst_66 = arith.constant 1.000000e+00 : f32
    %74 = vector.broadcast %cst_66 : f32 to vector<8x128xf32>
    %75 = arith.subf %74, %51 : vector<8x128xf32>
    %cst_67 = arith.constant 1.000000e+05 : f32
    %76 = vector.broadcast %cst_67 : f32 to vector<8x128xf32>
    %77 = arith.mulf %76, %75 : vector<8x128xf32>
    %c1_68 = arith.constant 1 : index
    %c0_69 = arith.constant 0 : index
    %78 = vector.load %arg12[%c1_68, %c0_69] : memref<2x128xf32, #tpu.memory_space<vmem>>, vector<1x128xf32>
    %79 = arith.addf %48, %77 : vector<8x128xf32>
    %cst_70 = arith.constant dense<0x7F800000> : vector<128xf32>
    %80 = vector.multi_reduction <minimumf>, %79, %cst_70 [0] : vector<8x128xf32> to vector<128xf32>
    %81 = vector.shape_cast %80 : vector<128xf32> to vector<1x128xf32>
    %82 = arith.minimumf %78, %81 : vector<1x128xf32>
    %c1_71 = arith.constant 1 : index
    %c0_72 = arith.constant 0 : index
    %83 = vector.load %arg12[%c1_71, %c0_72] : memref<2x128xf32, #tpu.memory_space<vmem>>, vector<1x128xf32>
    tpu.vector_store %arg12[%c1_71, %c0_72], %82 {strides = array<i32>} : memref<2x128xf32, #tpu.memory_space<vmem>>, vector<1x128xf32>,
    %c1_73 = arith.constant 1 : index
    %c0_74 = arith.constant 0 : index
    %84 = vector.load %arg13[%c1_73, %c0_74] : memref<2x128xf32, #tpu.memory_space<vmem>>, vector<1x128xf32>
    %85 = arith.subf %48, %77 : vector<8x128xf32>
    %cst_75 = arith.constant dense<0xFF800000> : vector<128xf32>
    %86 = vector.multi_reduction <maximumf>, %85, %cst_75 [0] : vector<8x128xf32> to vector<128xf32>
    %87 = vector.shape_cast %86 : vector<128xf32> to vector<1x128xf32>
    %88 = arith.maximumf %84, %87 : vector<1x128xf32>
    %c1_76 = arith.constant 1 : index
    %c0_77 = arith.constant 0 : index
    %89 = vector.load %arg13[%c1_76, %c0_77] : memref<2x128xf32, #tpu.memory_space<vmem>>, vector<1x128xf32>
    tpu.vector_store %arg13[%c1_76, %c0_77], %88 {strides = array<i32>} : memref<2x128xf32, #tpu.memory_space<vmem>>, vector<1x128xf32>,
    %c0_i32_78 = arith.constant 0 : i32
    %90 = arith.cmpi eq, %arg1, %c0_i32_78 : i32
    %91 = arith.extui %90 : i1 to i32
    %c0_i32_79 = arith.constant 0 : i32
    %92 = arith.cmpi ne, %91, %c0_i32_79 : i32
    scf.if %92 {
      %c0_80 = arith.constant 0 : index
      %c0_81 = arith.constant 0 : index
      %93 = vector.load %arg8[%c0_80, %c0_81] : memref<2x128xf32, #tpu.memory_space<vmem>>, vector<2x128xf32>
      %c8_i32 = arith.constant 8 : i32
      %94 = tpu.dynamic_rotate %93 by %c8_i32 dim 1 : vector<2x128xf32>, i32 -> vector<2x128xf32>
      %95 = arith.addf %93, %94 : vector<2x128xf32>
      %c16_i32 = arith.constant 16 : i32
      %96 = tpu.dynamic_rotate %95 by %c16_i32 dim 1 : vector<2x128xf32>, i32 -> vector<2x128xf32>
      %97 = arith.addf %95, %96 : vector<2x128xf32>
      %c32_i32 = arith.constant 32 : i32
      %98 = tpu.dynamic_rotate %97 by %c32_i32 dim 1 : vector<2x128xf32>, i32 -> vector<2x128xf32>
      %99 = arith.addf %97, %98 : vector<2x128xf32>
      %c64_i32 = arith.constant 64 : i32
      %100 = tpu.dynamic_rotate %99 by %c64_i32 dim 1 : vector<2x128xf32>, i32 -> vector<2x128xf32>
      %101 = arith.addf %99, %100 : vector<2x128xf32>
      %102 = vector.extract_strided_slice %101 {offsets = [0, 0], sizes = [2, 8], strides = [1, 1]} : vector<2x128xf32> to vector<2x8xf32>
      %c0_82 = arith.constant 0 : index
      %c0_83 = arith.constant 0 : index
      %103 = vector.load %arg9[%c0_82, %c0_83] : memref<2x128xf32, #tpu.memory_space<vmem>>, vector<2x128xf32>
      %c8_i32_84 = arith.constant 8 : i32
      %104 = tpu.dynamic_rotate %103 by %c8_i32_84 dim 1 : vector<2x128xf32>, i32 -> vector<2x128xf32>
      %105 = arith.addf %103, %104 : vector<2x128xf32>
      %c16_i32_85 = arith.constant 16 : i32
      %106 = tpu.dynamic_rotate %105 by %c16_i32_85 dim 1 : vector<2x128xf32>, i32 -> vector<2x128xf32>
      %107 = arith.addf %105, %106 : vector<2x128xf32>
      %c32_i32_86 = arith.constant 32 : i32
      %108 = tpu.dynamic_rotate %107 by %c32_i32_86 dim 1 : vector<2x128xf32>, i32 -> vector<2x128xf32>
      %109 = arith.addf %107, %108 : vector<2x128xf32>
      %c64_i32_87 = arith.constant 64 : i32
      %110 = tpu.dynamic_rotate %109 by %c64_i32_87 dim 1 : vector<2x128xf32>, i32 -> vector<2x128xf32>
      %111 = arith.addf %109, %110 : vector<2x128xf32>
      %112 = vector.extract_strided_slice %111 {offsets = [0, 0], sizes = [2, 8], strides = [1, 1]} : vector<2x128xf32> to vector<2x8xf32>
      %c0_88 = arith.constant 0 : index
      %c0_89 = arith.constant 0 : index
      %113 = vector.load %arg10[%c0_88, %c0_89] : memref<2x128xf32, #tpu.memory_space<vmem>>, vector<2x128xf32>
      %c8_i32_90 = arith.constant 8 : i32
      %114 = tpu.dynamic_rotate %113 by %c8_i32_90 dim 1 : vector<2x128xf32>, i32 -> vector<2x128xf32>
      %115 = arith.addf %113, %114 : vector<2x128xf32>
      %c16_i32_91 = arith.constant 16 : i32
      %116 = tpu.dynamic_rotate %115 by %c16_i32_91 dim 1 : vector<2x128xf32>, i32 -> vector<2x128xf32>
      %117 = arith.addf %115, %116 : vector<2x128xf32>
      %c32_i32_92 = arith.constant 32 : i32
      %118 = tpu.dynamic_rotate %117 by %c32_i32_92 dim 1 : vector<2x128xf32>, i32 -> vector<2x128xf32>
      %119 = arith.addf %117, %118 : vector<2x128xf32>
      %c64_i32_93 = arith.constant 64 : i32
      %120 = tpu.dynamic_rotate %119 by %c64_i32_93 dim 1 : vector<2x128xf32>, i32 -> vector<2x128xf32>
      %121 = arith.addf %119, %120 : vector<2x128xf32>
      %122 = vector.extract_strided_slice %121 {offsets = [0, 0], sizes = [2, 8], strides = [1, 1]} : vector<2x128xf32> to vector<2x8xf32>
      %c0_94 = arith.constant 0 : index
      %c0_95 = arith.constant 0 : index
      %123 = vector.load %arg12[%c0_94, %c0_95] : memref<2x128xf32, #tpu.memory_space<vmem>>, vector<2x128xf32>
      %c8_i32_96 = arith.constant 8 : i32
      %124 = tpu.dynamic_rotate %123 by %c8_i32_96 dim 1 : vector<2x128xf32>, i32 -> vector<2x128xf32>
      %125 = arith.minimumf %123, %124 : vector<2x128xf32>
      %c16_i32_97 = arith.constant 16 : i32
      %126 = tpu.dynamic_rotate %125 by %c16_i32_97 dim 1 : vector<2x128xf32>, i32 -> vector<2x128xf32>
      %127 = arith.minimumf %125, %126 : vector<2x128xf32>
      %c32_i32_98 = arith.constant 32 : i32
      %128 = tpu.dynamic_rotate %127 by %c32_i32_98 dim 1 : vector<2x128xf32>, i32 -> vector<2x128xf32>
      %129 = arith.minimumf %127, %128 : vector<2x128xf32>
      %c64_i32_99 = arith.constant 64 : i32
      %130 = tpu.dynamic_rotate %129 by %c64_i32_99 dim 1 : vector<2x128xf32>, i32 -> vector<2x128xf32>
      %131 = arith.minimumf %129, %130 : vector<2x128xf32>
      %132 = vector.extract_strided_slice %131 {offsets = [0, 0], sizes = [2, 8], strides = [1, 1]} : vector<2x128xf32> to vector<2x8xf32>
      %c0_100 = arith.constant 0 : index
      %c0_101 = arith.constant 0 : index
      %133 = vector.load %arg13[%c0_100, %c0_101] : memref<2x128xf32, #tpu.memory_space<vmem>>, vector<2x128xf32>
      %c8_i32_102 = arith.constant 8 : i32
      %134 = tpu.dynamic_rotate %133 by %c8_i32_102 dim 1 : vector<2x128xf32>, i32 -> vector<2x128xf32>
      %135 = arith.maximumf %133, %134 : vector<2x128xf32>
      %c16_i32_103 = arith.constant 16 : i32
      %136 = tpu.dynamic_rotate %135 by %c16_i32_103 dim 1 : vector<2x128xf32>, i32 -> vector<2x128xf32>
      %137 = arith.maximumf %135, %136 : vector<2x128xf32>
      %c32_i32_104 = arith.constant 32 : i32
      %138 = tpu.dynamic_rotate %137 by %c32_i32_104 dim 1 : vector<2x128xf32>, i32 -> vector<2x128xf32>
      %139 = arith.maximumf %137, %138 : vector<2x128xf32>
      %c64_i32_105 = arith.constant 64 : i32
      %140 = tpu.dynamic_rotate %139 by %c64_i32_105 dim 1 : vector<2x128xf32>, i32 -> vector<2x128xf32>
      %141 = arith.maximumf %139, %140 : vector<2x128xf32>
      %142 = vector.extract_strided_slice %141 {offsets = [0, 0], sizes = [2, 8], strides = [1, 1]} : vector<2x128xf32> to vector<2x8xf32>
      %c0_106 = arith.constant 0 : index
      %c0_107 = arith.constant 0 : index
      %143 = vector.load %arg11[%c0_106, %c0_107] : memref<2x16xf32, #tpu.memory_space<vmem>>, vector<2x16xf32>
      %cst_108 = arith.constant dense<0.000000e+00> : vector<2xf32>
      %144 = vector.multi_reduction <add>, %143, %cst_108 [1] : vector<2x16xf32> to vector<2xf32>
      %145 = vector.shape_cast %144 : vector<2xf32> to vector<2x1xf32>
      %146 = vector.broadcast %145 : vector<2x1xf32> to vector<2x8xf32>
      %147 = arith.divf %102, %146 : vector<2x8xf32>
      %cst_109 = arith.constant 2.000000e+00 : f32
      %148 = vector.broadcast %cst_109 : f32 to vector<2x8xf32>
      %149 = arith.mulf %148, %147 : vector<2x8xf32>
      %150 = arith.mulf %149, %112 : vector<2x8xf32>
      %151 = arith.subf %122, %150 : vector<2x8xf32>
      %152 = arith.mulf %147, %147 : vector<2x8xf32>
      %153 = vector.broadcast %145 : vector<2x1xf32> to vector<2x8xf32>
      %154 = arith.mulf %152, %153 : vector<2x8xf32>
      %155 = arith.addf %151, %154 : vector<2x8xf32>
      %156 = vector.broadcast %145 : vector<2x1xf32> to vector<2x8xf32>
      %157 = arith.divf %155, %156 : vector<2x8xf32>
      %c0_110 = arith.constant 0 : index
      %c0_111 = arith.constant 0 : index
      %158 = vector.load %arg5[%c0_110, %c0_111] : memref<32x16xf32, #tpu.memory_space<vmem>>, vector<32x16xf32>
      %159 = vector.extract_strided_slice %158 {offsets = [0, 0], sizes = [8, 16], strides = [1, 1]} : vector<32x16xf32> to vector<8x16xf32>
      %cst_112 = arith.constant dense<0.000000e+00> : vector<2x16xf32>
      %160 = tpu.matmul %147, %159, %cst_112 {dimension_numbers = #tpu.dot_dimension_numbers<[1], [0], [0], [1], [0, 0, 1, 1], [], []>} : vector<2x8xf32>, vector<8x16xf32>, vector<2x16xf32> -> vector<2x16xf32>
      %161 = vector.extract_strided_slice %158 {offsets = [8, 0], sizes = [8, 16], strides = [1, 1]} : vector<32x16xf32> to vector<8x16xf32>
      %cst_113 = arith.constant dense<0.000000e+00> : vector<2x16xf32>
      %162 = tpu.matmul %132, %161, %cst_113 {dimension_numbers = #tpu.dot_dimension_numbers<[1], [0], [0], [1], [0, 0, 1, 1], [], []>} : vector<2x8xf32>, vector<8x16xf32>, vector<2x16xf32> -> vector<2x16xf32>
      %163 = arith.addf %160, %162 : vector<2x16xf32>
      %164 = vector.extract_strided_slice %158 {offsets = [16, 0], sizes = [8, 16], strides = [1, 1]} : vector<32x16xf32> to vector<8x16xf32>
      %cst_114 = arith.constant dense<0.000000e+00> : vector<2x16xf32>
      %165 = tpu.matmul %142, %164, %cst_114 {dimension_numbers = #tpu.dot_dimension_numbers<[1], [0], [0], [1], [0, 0, 1, 1], [], []>} : vector<2x8xf32>, vector<8x16xf32>, vector<2x16xf32> -> vector<2x16xf32>
      %166 = arith.addf %163, %165 : vector<2x16xf32>
      %167 = vector.extract_strided_slice %158 {offsets = [24, 0], sizes = [8, 16], strides = [1, 1]} : vector<32x16xf32> to vector<8x16xf32>
      %cst_115 = arith.constant dense<0.000000e+00> : vector<2x16xf32>
      %168 = tpu.matmul %157, %167, %cst_115 {dimension_numbers = #tpu.dot_dimension_numbers<[1], [0], [0], [1], [0, 0, 1, 1], [], []>} : vector<2x8xf32>, vector<8x16xf32>, vector<2x16xf32> -> vector<2x16xf32>
      %169 = arith.addf %166, %168 : vector<2x16xf32>
      %c0_116 = arith.constant 0 : index
      %c0_117 = arith.constant 0 : index
      %170 = vector.load %arg6[%c0_116, %c0_117] : memref<1x16xf32, #tpu.memory_space<vmem>>, vector<1x16xf32>
      %171 = vector.broadcast %170 : vector<1x16xf32> to vector<2x16xf32>
      %172 = arith.addf %169, %171 : vector<2x16xf32>
      %c0_118 = arith.constant 0 : index
      %c0_119 = arith.constant 0 : index
      %173 = vector.load %arg7[%c0_118, %c0_119] : memref<2x16xf32, #tpu.memory_space<vmem>>, vector<2x16xf32>
      tpu.vector_store %arg7[%c0_118, %c0_119], %172 {strides = array<i32>} : memref<2x16xf32, #tpu.memory_space<vmem>>, vector<2x16xf32>,
    } else {
    }
    return
  }
  func.func @transform_0(%arg0: i32, %arg1: i32) -> (i32, i32, i32) {
    %c0_i32 = arith.constant 0 : i32
    %c0_i32_0 = arith.constant 0 : i32
    return %arg0, %arg1, %c0_i32 : i32, i32, i32
  }
  func.func @transform_1(%arg0: i32, %arg1: i32) -> (i32, i32, i32) {
    %c0_i32 = arith.constant 0 : i32
    %c0_i32_0 = arith.constant 0 : i32
    return %arg0, %arg1, %c0_i32 : i32, i32, i32
  }
  func.func @transform_2(%arg0: i32, %arg1: i32) -> (i32, i32) {
    %c0_i32 = arith.constant 0 : i32
    %c0_i32_0 = arith.constant 0 : i32
    %c0_i32_1 = arith.constant 0 : i32
    return %c0_i32, %c0_i32_0 : i32, i32
  }
  func.func @transform_3(%arg0: i32, %arg1: i32) -> (i32, i32) {
    %c0_i32 = arith.constant 0 : i32
    %c0_i32_0 = arith.constant 0 : i32
    %c0_i32_1 = arith.constant 0 : i32
    return %c0_i32, %c0_i32_0 : i32, i32
  }
  func.func @transform_4(%arg0: i32, %arg1: i32) -> (i32, i32) {
    %c0_i32 = arith.constant 0 : i32
    %c0_i32_0 = arith.constant 0 : i32
    %c0_i32_1 = arith.constant 0 : i32
    return %c0_i32, %c0_i32_0 : i32, i32
  }
  func.func @transform_5(%arg0: i32, %arg1: i32) -> (i32, i32) {
    %c0_i32 = arith.constant 0 : i32
    %c0_i32_0 = arith.constant 0 : i32
    return %arg0, %c0_i32 : i32, i32
  }
}

</mosaic_0001>

<bundles_post_ra>
// kernel: tpu_custom_call.1
= control target key start
LH: loop header
LB: loop body
LE: loop exit
PB: predicated region body
PF: predicated region fallthrough
CT: control target
= control target key end

     0   :  { %v813_v3 = vmov 0.0|0.0   ;;  %v814_v5 = vmov 0.0   ;;  %vm36_vm0 = vcmask 130048   ;;  %vm815_vm1 = vmmov 0   ;;  %s946_s0 = inlined_call_operand.vmem [shape: f32[2,8,128], index: 0, kind: input, shape index: {}]   ;;  %s947_s1 = inlined_call_operand.vmem [shape: f32[2,8,16], index: 1, kind: input, shape index: {}]   ;;  %s948_s2 = inlined_call_operand.vmem [shape: f32[16,128], index: 2, kind: input, shape index: {}]   ;;  %s949_s3 = inlined_call_operand.vmem [shape: f32[32,16], index: 3, kind: input, shape index: {}]   ;;  %s950_s4 = inlined_call_operand.vmem [shape: f32[1,16], index: 4, kind: input, shape index: {}]   ;;  %s951_s5 = inlined_call_operand.hbm [shape: f32[2,16], index: 5, kind: output, shape index: {}]  }
   0x1   :  { %v32_v0 = vld [vmem:[%s948_s2] sm:$0xff]  ;;  %v33_v1 = vld [vmem:[%s948_s2 + $0x8] sm:$0xff]  ;;  %771 = vmatprep.subr.bf16.mxu0 %v813_v3  ;;  %774 = vmatprep.subr.bf16.mxu1 %v813_v3  ;;  %25 = vst [vmem:[#allocation2] sm:$0x3] %v814_v5  ;;  %26 = vst [vmem:[#allocation3] sm:$0x3] %v814_v5 }
   0x2   :  { %v35_v2 = vld [vmem:[%s947_s1] sm:$0xff]  ;;  %v772_v4 = vpack.c.bf16 %v33_v1, %v32_v0  ;;  %27 = vst [vmem:[#allocation4] sm:$0x3] %v814_v5  ;;  %v716_v6 = vld [vmem:[%s947_s1 + $0x8] sm:$0xff]  ;;  %741 = vmatprep.mubr.msk.f32.mxu0 %vm815_vm1, %v814_v5  ;;  %748 = vmatprep.mubr.msk.f32.mxu1 %vm815_vm1, %v814_v5 }
   0x3   :  { %v34_v7 = vld [vmem:[%s946_s0] sm:$0xff]  ;;  %v715_v8 = vld [vmem:[%s946_s0 + $0x8] sm:$0xff]  ;;  %v879_v9 = vsel %vm36_vm0, %v35_v2, 0.0  ;;  %v882_v10 = vsel %vm36_vm0, %v716_v6, 0.0 }
   0x4   :  { %v112_v11 = vrot.slane %v34_v7, 4  ;;  %v251_v12 = vrot.slane %v715_v8, 4 }
   0x5   :  { %10 = vsyncpa [#allocation9], 0  ;;  %773 = vmatpush3.bf16.msra.mxu0 %v772_v4  ;;  %776 = vmatpush3.bf16.msra.mxu1 %v772_v4  ;;  %v816_v15 = vmov 3e+38   ;;  %v817_v16 = vmov -3e+38  }
   0x6   :  { %v113_v13 = vadd.f32 %v112_v11, %v34_v7  ;;  %v252_v14 = vadd.f32 %v715_v8, %v251_v12  ;;  %30 = vst [vmem:[#allocation6] sm:$0x3] %v816_v15  ;;  %31 = vst [vmem:[#allocation7] sm:$0x3] %v817_v16  ;;  %756 = vmatprep.subr.mxu1 %v814_v5  ;;  %751 = vmatprep.subr.mxu0 %v814_v5  ;;  %s818_s0 = smov 8   ;;  %s819_s1 = smov 16  }
   0x7   :  { %vm28_vm2 = vcmask 123904   ;;  %vm148_vm3 = vcmask 122880   ;;  %s820_s29 = smov 32   ;;  %s821_s30 = smov 64   ;;  %vm396_vm4 = vcmask 64512  }
   0x8   :  { %742 = vmatmul.mubr.msk.f32.vlgmr.msra.gmra.mrb[0].mxu0 %vm36_vm0, %v35_v2  ;;  %749 = vmatmul.mubr.msk.f32.vlgmr.msra.gmra.mrb[0].mxu1 %vm36_vm0, %v716_v6  ;;  %v114_v17 = vrot.slane %v113_v13, 2  ;;  %v253_v18 = vrot.slane %v252_v14, 2  ;;  %v111_v23 = vld [vmem:[#allocation2] sm:$0x1]  ;;  %v250_v24 = vld [vmem:[#allocation2 + $0x1] sm:$0x1] }
   0x9   :  { %758 = vmatprep.mubr.msk.f32.mxu1 %vm815_vm1, %v814_v5  ;;  %753 = vmatprep.mubr.msk.f32.mxu0 %vm815_vm1, %v814_v5  ;;  %v120_v11 = vld [vmem:[#allocation3] sm:$0x1]  ;;  %29 = vst.msk [vmem:[#allocation5] sm:$0x3] %vm28_vm2, %v814_v5  ;;  %s822_s15 = smov [#allocation8]  }
   0xa   :  { %v115_v19 = vadd.f32 %v114_v17, %v113_v13  ;;  %v254_v20 = vadd.f32 %v253_v18, %v252_v14  ;;  %s706_s16 = sshll.u32 %s822_s15, 4  ;;  %s707_s16 = int_to_ptr.vmem [resolvable:$true] %s706_s16 }
   0xb   :  { %s789_s17 = scalar_lea.vmem %s707_s16, 32  ;;  %p794_p1 = scmp.lt.s32.totalorder %s707_s16, %s707_s16 }
   0xc   :  { %v116_v21 = vrot.slane %v115_v19, 1  ;;  %v255_v22 = vrot.slane %v254_v20, 1  ;;  %p790_p0 = scmp.ne.s32.totalorder %s707_s16, %s789_s17  ;;  %p795_p2 = scmp.lt.s32.totalorder %s789_s17, %s789_s17 }
   0xe   :  { %v117_v25 = vadd.f32 %v116_v21, %v115_v19  ;;  %v256_v26 = vadd.f32 %v255_v22, %v254_v20  ;;  %v259_v20 = vld [vmem:[#allocation3 + $0x1] sm:$0x1]  ;;  %v129_v21 = vld [vmem:[#allocation4] sm:$0x1]  ;;  %p796_p3 = por %p795_p2, %p794_p1 }
  0x10   :  { %v118_v27 = vadd.f32 %v117_v25, %v111_v23  ;;  %v257_v28 = vadd.f32 %v256_v26, %v250_v24  ;;  %p797_p4 = pnand %p796_p3, %p790_p0 }
  0x12   :  { %119 = vst [vmem:[#allocation2] sm:$0x1] %v118_v27  ;;  %258 = vst [vmem:[#allocation2 + $0x1] sm:$0x1] %v257_v28 }
  0x19   :  { %v892_v29 = vld [vmem:[#allocation2] sm:$0x3] }
  0x1a   :  { %314 = vrot.lane.b32.xlu0 %v892_v29, %s818_s0 }
  0xdb   :  { %v106_v30 = vpop.f32.mrb[0].mxu0  ;;  %v245_v31 = vpop.f32.mrb[0].mxu1 }
  0xdc   :  { %v110_v32 = vmul.f32 %v106_v30, %v34_v7  ;;  %v150_v33 = vsub.f32 1.0, %v106_v30  ;;  %v249_v34 = vmul.f32 %v715_v8, %v245_v31  ;;  %v288_v35 = vsub.f32 1.0, %v245_v31  ;;  %v743_v36 = vpop.f32.mrb[1].mxu0  ;;  %v750_v37 = vpop.f32.mrb[1].mxu1  ;;  %v268_v31 = vld [vmem:[#allocation4 + $0x1] sm:$0x1] }
  0xde   :  { %v121_v38 = vrot.slane %v110_v32, 4  ;;  %v130_v39 = vmul.f32 %v110_v32, %v34_v7  ;;  %v151_v40 = vmul.f32 100000.0, %v150_v33  ;;  %v260_v41 = vrot.slane %v249_v34, 4  ;;  %v162_v33 = vld [vmem:[#allocation7] sm:$0x1] }
  0xdf   :  { %v269_v42 = vmul.f32 %v715_v8, %v249_v34  ;;  %v289_v43 = vmul.f32 100000.0, %v288_v35 }
  0xe0   :  { %v122_v44 = vadd.f32 %v121_v38, %v110_v32  ;;  %v131_v45 = vrot.slane %v130_v39, 4  ;;  %v153_v46 = vadd.f32 %v151_v40, %v34_v7  ;;  %v163_v47 = vsub.f32 %v34_v7, %v151_v40  ;;  %v152_v32 = vld [vmem:[#allocation6] sm:$0x1] }
  0xe1   :  { %v261_v48 = vadd.f32 %v260_v41, %v249_v34  ;;  %v270_v49 = vrot.slane %v269_v42, 4  ;;  %v291_v50 = vadd.f32 %v715_v8, %v289_v43  ;;  %v301_v51 = vsub.f32 %v715_v8, %v289_v43  ;;  %v290_v41 = vld [vmem:[#allocation6 + $0x1] sm:$0x1] }
  0xe2   :  { %v123_v52 = vrot.slane %v122_v44, 2  ;;  %v132_v53 = vadd.f32 %v131_v45, %v130_v39  ;;  %v154_v54 = vrot.slane %v153_v46, 4  ;;  %v164_v55 = vrot.slane %v163_v47, 4 }
  0xe3   :  { %v262_v56 = vrot.slane %v261_v48, 2  ;;  %v271_v57 = vadd.f32 %v270_v49, %v269_v42  ;;  %v292_v58 = vrot.slane %v291_v50, 4  ;;  %v302_v59 = vrot.slane %v301_v51, 4  ;;  %v300_v42 = vld [vmem:[#allocation7 + $0x1] sm:$0x1] }
  0xe4   :  { %v124_v60 = vadd.f32 %v123_v52, %v122_v44  ;;  %v133_v61 = vrot.slane %v132_v53, 2  ;;  %v155_v62 = vmin.f32 %v153_v46, %v154_v54  ;;  %v165_v63 = vmax.f32 %v163_v47, %v164_v55 }
  0xe5   :  { %v263_v0 = vadd.f32 %v262_v56, %v261_v48  ;;  %v272_v1 = vrot.slane %v271_v57, 2  ;;  %v293_v2 = vmin.f32 %v291_v50, %v292_v58  ;;  %v303_v3 = vmax.f32 %v301_v51, %v302_v59 }
  0xe6   :  { %v125_v4 = vrot.slane %v124_v60, 1  ;;  %v134_v6 = vadd.f32 %v133_v61, %v132_v53  ;;  %v156_v7 = vrot.slane %v155_v62, 2  ;;  %v166_v8 = vrot.slane %v165_v63, 2  ;;  %v315_v53 = vpop.permute.xlu0 %314 }
  0xe7   :  { %v264_v12 = vrot.slane %v263_v0, 1  ;;  %v273_v13 = vadd.f32 %v272_v1, %v271_v57  ;;  %v294_v14 = vrot.slane %v293_v2, 2  ;;  %v304_v15 = vrot.slane %v303_v3, 2 }
  0xe8   :  { %v126_v16 = vadd.f32 %v125_v4, %v124_v60  ;;  %v135_v17 = vrot.slane %v134_v6, 1  ;;  %v157_v18 = vmin.f32 %v155_v62, %v156_v7  ;;  %v167_v19 = vmax.f32 %v165_v63, %v166_v8 }
  0xe9   :  { %v265_v22 = vadd.f32 %v264_v12, %v263_v0  ;;  %v274_v23 = vrot.slane %v273_v13, 1  ;;  %v295_v24 = vmin.f32 %v293_v2, %v294_v14  ;;  %v305_v25 = vmax.f32 %v303_v3, %v304_v15  ;;  %v278_v14 = vld [vmem:[#allocation5 + $0x1] sm:$0x1] }
  0xea   :  { %v127_v26 = vadd.f32 %v126_v16, %v120_v11  ;;  %v136_v27 = vadd.f32 %v135_v17, %v134_v6  ;;  %v158_v28 = vrot.slane %v157_v18, 1  ;;  %v168_v30 = vrot.slane %v167_v19, 1 }
  0xeb   :  { %v266_v34 = vadd.f32 %v265_v22, %v259_v20  ;;  %v275_v35 = vadd.f32 %v274_v23, %v273_v13  ;;  %v296_v36 = vrot.slane %v295_v24, 1  ;;  %v306_v37 = vrot.slane %v305_v25, 1  ;;  %v139_v13 = vld [vmem:[#allocation5] sm:$0x1] }
  0xec   :  { %128 = vst [vmem:[#allocation3] sm:$0x1] %v127_v26  ;;  %v137_v38 = vadd.f32 %v136_v27, %v129_v21  ;;  %v159_v39 = vmin.f32 %v157_v18, %v158_v28  ;;  %v169_v40 = vmax.f32 %v167_v19, %v168_v30  ;;  %v316_v55 = vadd.f32 %v315_v53, %v892_v29 }
  0xed   :  { %267 = vst [vmem:[#allocation3 + $0x1] sm:$0x1] %v266_v34  ;;  %v276_v43 = vadd.f32 %v275_v35, %v268_v31  ;;  %v297_v44 = vmin.f32 %v295_v24, %v296_v36  ;;  %v307_v45 = vmax.f32 %v305_v25, %v306_v37  ;;  %v141_v56 = vrot.slane %v879_v9, 4  ;;  %v392_v31 = vld [vmem:[%s949_s3] sm:$0xff] }
  0xee   :  { %138 = vst [vmem:[#allocation4] sm:$0x1] %v137_v38  ;;  %v160_v46 = vmin.f32 %v152_v32, %v159_v39  ;;  %v170_v47 = vmax.f32 %v162_v33, %v169_v40  ;;  %v280_v57 = vrot.slane %v882_v10, 4  ;;  %757 = vmatpush3.msra.mxu1 %v392_v31  ;;  %v393_v32 = vld [vmem:[%s949_s3 + $0x8] sm:$0xff] }
  0xef   :  { %277 = vst [vmem:[#allocation4 + $0x1] sm:$0x1] %v276_v43  ;;  %v298_v48 = vmin.f32 %v290_v41, %v297_v44  ;;  %v308_v49 = vmax.f32 %v300_v42, %v307_v45  ;;  %v142_v58 = vadd.f32 %v141_v56, %v879_v9  ;;  %766 = vmatprep.subr.mxu1 %v814_v5 }
  0xf0   :  { %161 = vst [vmem:[#allocation6] sm:$0x1] %v160_v46  ;;  %171 = vst [vmem:[#allocation7] sm:$0x1] %v170_v47  ;;  %v281_v59 = vadd.f32 %v280_v57, %v882_v10  ;;  %752 = vmatpush3.msra.mxu0 %v393_v32  ;;  %v395_v46 = vld [vmem:[%s949_s3 + $0x18] sm:$0xff] }
  0xf1   :  { %299 = vst [vmem:[#allocation6 + $0x1] sm:$0x1] %v298_v48  ;;  %309 = vst [vmem:[#allocation7 + $0x1] sm:$0x1] %v308_v49  ;;  %v143_v60 = vrot.slane %v142_v58, 2  ;;  %761 = vmatprep.subr.mxu0 %v814_v5 }
  0xf2   :  { %v282_v61 = vrot.slane %v281_v59, 2 }
  0xf3   :  { %v144_v62 = vadd.f32 %v143_v60, %v142_v58 }
  0xf4   :  { %v326_v50 = vld [vmem:[#allocation3] sm:$0x3]  ;;  %v283_v63 = vadd.f32 %v282_v61, %v281_v59  ;;  %v394_v59 = vld [vmem:[%s949_s3 + $0x10] sm:$0xff] }
  0xf5   :  { %327 = vrot.lane.b32.xlu0 %v326_v50, %s818_s0  ;;  %v145_v3 = vrot.slane %v144_v62, 1 }
  0xf6   :  { %v339_v51 = vld [vmem:[#allocation4] sm:$0x3]  ;;  %v284_v29 = vrot.slane %v283_v63, 1 }
  0xf7   :  { %340 = vrot.lane.b32.xlu1 %v339_v51, %s818_s0  ;;  %v146_v7 = vadd.f32 %v145_v3, %v144_v62 }
  0xf8   :  { %v365_v52 = vld [vmem:[#allocation7] sm:$0x3]  ;;  %v352_v54 = vld [vmem:[#allocation6] sm:$0x3]  ;;  %v285_v10 = vadd.f32 %v284_v29, %v283_v63 }
  0xf9   :  { %366 = vrot.lane.b32.xlu0 %v365_v52, %s818_s0  ;;  %v147_v16 = vadd.f32 %v146_v7, %v139_v13 }
  0xfa   :  { %v286_v17 = vadd.f32 %v285_v10, %v278_v14  ;;  %v722_v10 = vld [vmem:[%s950_s4] ss:$0 sm:$0xff] }
  0xfb   :  { %353 = vrot.lane.b32.xlu1 %v352_v54, %s818_s0  ;;  %149 = vst.msk [vmem:[#allocation5] sm:$0x1] %vm148_vm3, %v147_v16 }
  0xfc   :  { %287 = vst.msk [vmem:[#allocation5 + $0x1] sm:$0x1] %vm148_vm3, %v286_v17 }
  0xff   :  { %317 = vrot.lane.b32.xlu1 %v316_v55, %s819_s1 }
 0x103   :  { %v378_v28 = vld [vmem:[#allocation5] sm:$0x3] }
 0x104   :  { %v380_v30 = vsel %vm28_vm2, %v378_v28, 0.0 }
 0x167   :  { %v328_v0 = vpop.permute.xlu0 %327 }
 0x168   :  { %v329_v1 = vadd.f32 %v328_v0, %v326_v50 }
 0x169   :  { %v341_v2 = vpop.permute.xlu1 %340 }
 0x16a   :  { %v342_v4 = vadd.f32 %v341_v2, %v339_v51  ;;  %330 = vrot.lane.b32.xlu0 %v329_v1, %s819_s1 }
 0x16b   :  { %v367_v6 = vpop.permute.xlu0 %366 }
 0x16c   :  { %343 = vrot.lane.b32.xlu1 %v342_v4, %s819_s1  ;;  %v368_v8 = vmax.f32 %v365_v52, %v367_v6 }
 0x16d   :  { %v354_v9 = vpop.permute.xlu1 %353 }
 0x16e   :  { %v355_v11 = vmin.f32 %v352_v54, %v354_v9 }
 0x170   :  { %356 = vrot.lane.b32.xlu0 %v355_v11, %s819_s1  ;;  %369 = vrot.lane.b32.xlu1 %v368_v8, %s819_s1 }
 0x171   :  { %v318_v12 = vpop.permute.xlu1 %317 }
 0x172   :  { %v319_v15 = vadd.f32 %v318_v12, %v316_v55 }
 0x174   :  { %320 = vrot.lane.b32.xlu0 %v319_v15, %s820_s29 }
 0x1dc   :  { %v331_v18 = vpop.permute.xlu0 %330 }
 0x1dd   :  { %v332_v19 = vadd.f32 %v331_v18, %v329_v1 }
 0x1de   :  { %v344_v20 = vpop.permute.xlu1 %343 }
 0x1df   :  { %v345_v21 = vadd.f32 %v344_v20, %v342_v4  ;;  %333 = vrot.lane.b32.xlu1 %v332_v19, %s820_s29 }
 0x1e1   :  { %346 = vrot.lane.b32.xlu0 %v345_v21, %s820_s29 }
 0x1e2   :  { %v370_v22 = vpop.permute.xlu1 %369  ;;  %v357_v23 = vpop.permute.xlu0 %356 }
 0x1e3   :  { %v371_v24 = vmax.f32 %v368_v8, %v370_v22  ;;  %v358_v25 = vmin.f32 %v355_v11, %v357_v23 }
 0x1e5   :  { %372 = vrot.lane.b32.xlu0 %v371_v24, %s820_s29  ;;  %359 = vrot.lane.b32.xlu1 %v358_v25, %s820_s29 }
 0x1e6   :  { %v321_v26 = vpop.permute.xlu0 %320 }
 0x1e7   :  { %v322_v27 = vadd.f32 %v321_v26, %v319_v15 }
 0x1e9   :  { %323 = vrot.lane.b32.xlu0 %v322_v27, %s821_s30 }
 0x209   :  { %381 = vadd.xlane.f32.xlu1 %v380_v30 }
 0x251   :  { %v334_v33 = vpop.permute.xlu1 %333 }
 0x252   :  { %v335_v34 = vadd.f32 %v334_v33, %v332_v19 }
 0x253   :  { %v347_v35 = vpop.permute.xlu0 %346 }
 0x254   :  { %336 = vrot.lane.b32.xlu0 %v335_v34, %s821_s30  ;;  %v348_v36 = vadd.f32 %v347_v35, %v345_v21 }
 0x257   :  { %v360_v37 = vpop.permute.xlu1 %359  ;;  %v373_v39 = vpop.permute.xlu0 %372 }
 0x258   :  { %349 = vrot.lane.b32.xlu0 %v348_v36, %s821_s30  ;;  %v361_v38 = vmin.f32 %v358_v25, %v360_v37  ;;  %v374_v40 = vmax.f32 %v371_v24, %v373_v39 }
 0x25b   :  { %v324_v42 = vpop.permute.xlu0 %323 }
 0x25c   :  { %362 = vrot.lane.b32.xlu0 %v361_v38, %s821_s30  ;;  %v325_v43 = vadd.f32 %v324_v42, %v322_v27 }
 0x260   :  { %375 = vrot.lane.b32.xlu0 %v374_v40, %s821_s30 }
 0x296   :  { %v382_v41 = vpop.xlane.xlu1 %381 }
 0x297   :  { %787 = vrcp.f32 %v382_v41 }
 0x2a1   :  { %v788_v44 = vpop.eup %787 }
 0x2a2   :  { %v384_v45 = vmul.f32 %v788_v44, %v325_v43 }
 0x2a4   :  { %759 = vmatmul.mubr.msk.f32.vlgmr.msra.gmra.mrb[2].mxu1 %vm396_vm4, %v384_v45  ;;  %v388_v49 = vmul.f32 %v384_v45, %v384_v45  ;;  %v385_v50 = vmul.f32 2.0, %v384_v45 }
 0x2a5   :  { %767 = vmatpush3.msra.mxu1 %v395_v46  ;;  %768 = vmatprep.mubr.msk.f32.mxu1 %vm815_vm1, %v814_v5 }
 0x2a6   :  { %v389_v54 = vmul.f32 %v388_v49, %v382_v41 }
 0x2c6   :  { %v337_v47 = vpop.permute.xlu0 %336 }
 0x2c7   :  { %v338_v48 = vadd.f32 %v337_v47, %v335_v34 }
 0x2c9   :  { %v386_v52 = vmul.f32 %v385_v50, %v338_v48 }
 0x2ca   :  { %v350_v51 = vpop.permute.xlu0 %349 }
 0x2cb   :  { %v351_v53 = vadd.f32 %v350_v51, %v348_v36 }
 0x2cd   :  { %v387_v55 = vsub.f32 %v351_v53, %v386_v52 }
 0x2ce   :  { %v363_v56 = vpop.permute.xlu0 %362 }
 0x2cf   :  { %v390_v57 = vadd.f32 %v389_v54, %v387_v55  ;;  %v364_v58 = vmin.f32 %v361_v38, %v363_v56 }
 0x2d1   :  { %v391_v60 = vmul.f32 %v788_v44, %v390_v57  ;;  %754 = vmatmul.mubr.msk.f32.vlgmr.msra.gmra.mrb[2].mxu0 %vm396_vm4, %v364_v58 }
 0x2d2   :  { %762 = vmatpush3.msra.mxu0 %v394_v59  ;;  %v376_v61 = vpop.permute.xlu0 %375  ;;  %763 = vmatprep.mubr.msk.f32.mxu0 %vm815_vm1, %v814_v5 }
 0x2d3   :  { %v377_v62 = vmax.f32 %v374_v40, %v376_v61  ;;  %769 = vmatmul.mubr.msk.f32.vlgmr.msra.gmra.mrb[4].mxu1 %vm396_vm4, %v391_v60 }
 0x2d5   :  { %764 = vmatmul.mubr.msk.f32.vlgmr.msra.gmra.mrb[4].mxu0 %vm396_vm4, %v377_v62 }
 0x377   :  { %v539_v63 = vpop.f32.mrb[2].mxu1 }
 0x378   :  { %v760_v0 = vpop.f32.mrb[3].mxu1 }
 0x3a4   :  { %v466_v1 = vpop.f32.mrb[2].mxu0 }
 0x3a5   :  { %v540_v2 = vadd.f32 %v539_v63, %v466_v1  ;;  %v755_v3 = vpop.f32.mrb[3].mxu0 }
 0x3a6   :  { %v686_v29 = vpop.f32.mrb[4].mxu1 }
 0x3a7   :  { %v770_v4 = vpop.f32.mrb[5].mxu1 }
 0x3a8   :  { %v612_v6 = vpop.f32.mrb[4].mxu0 }
 0x3a9   :  { %v616_v9 = vadd.f32 %v612_v6, %v540_v2  ;;  %v765_v7 = vpop.f32.mrb[5].mxu0 }
 0x3ab   :  { %v690_v5 = vadd.f32 %v686_v29, %v616_v9 }
 0x3ad   :  { %v698_v8 = vadd.f32 %v722_v10, %v690_v5 }
 0x3af   :  { %699 = vst.msk [vmem:[#allocation8] sm:$0x3] %vm28_vm2, %v698_v8 }
 0x3b0   :  { %800 = shalt.err (!%p797_p4)
}
 0x3b1   :  { %s801_s20 = scalar_lea.hbm %s951_s5, 32 }
 0x3b2   :  { %p802_p5 = scmp.ne.s32.totalorder %s951_s5, %s801_s20  ;;  %p805_p6 = scmp.lt.u32.totalorder %s801_s20, %s951_s5 }
 0x3b4   :  { %p807_p7 = pnand %p805_p6, %p802_p5 }
 0x3b6   :  { %810 = shalt.err (!%p807_p7)
}
 0x3b7   :  { %709 = dma.vmem_to_hbm [thread:$0]  %s707_s16, 32, %s951_s5, [#allocation9]  }
 0x3b8   :  { %811 = dma.done.wait [#allocation9], 32  }
 0x3b9   :  { %812 = vsyncadd [#allocation9], 4294967264 }
 0x3ba   :  { %713 = vsyncpa [#allocation9], 1 }

</bundles_post_ra>
